<compile_context>
chip_gen: v7x
topology: tpu7x:2x2x1
jax: 0.10.0
libtpu: 0.0.40
codegen_flags: <defaults>
</compile_context>

<pallas_src>
import collections
import functools

import jax
import jax.numpy as jnp
from jax.experimental import pallas as pl
from jax.experimental.pallas import tpu as pltpu


def _round_up(v, m):
    return (v + m - 1) // m * m


ParamMeta = collections.namedtuple(
    "ParamMeta", ["r_b1", "r_w2", "r_b2", "r_w3", "r_b3", "h1", "h2", "d_out"])


def pack_small_params(b1, w2, b2, w3, b3):
    """Pack the small parameters into ONE contiguous f32 slab (one DMA instead of five).

    Each segment starts on an 8-row (sublane) boundary so the in-kernel static slices are
    tile-friendly.  Call this ONCE per parameter set and reuse the slab across calls.
    """
    h1, h2 = w2.shape
    d_out = w3.shape[1]
    cols = max(h1, h2, d_out)

    r_b1 = 0
    r_w2 = r_b1 + 8
    r_b2 = r_w2 + _round_up(h1, 8)
    r_w3 = r_b2 + 8
    r_b3 = r_w3 + _round_up(h2, 8)
    p_rows = r_b3 + 8

    packed = jnp.zeros((p_rows, cols), jnp.float32)
    packed = packed.at[r_b1, 0:h1].set(b1.astype(jnp.float32).reshape(h1))
    packed = packed.at[r_w2:r_w2 + h1, 0:h2].set(w2.astype(jnp.float32))
    packed = packed.at[r_b2, 0:h2].set(b2.astype(jnp.float32).reshape(h2))
    packed = packed.at[r_w3:r_w3 + h2, 0:d_out].set(w3.astype(jnp.float32))
    packed = packed.at[r_b3, 0:d_out].set(b3.astype(jnp.float32).reshape(d_out))
    return packed, ParamMeta(r_b1, r_w2, r_b2, r_w3, r_b3, h1, h2, d_out)


def _mlp_kernel(x_ref, w1_ref, p_ref, o_ref, *, meta):
    m = meta
    # Static, sublane-aligned slices of the packed parameter slab.
    b1 = p_ref[m.r_b1:m.r_b1 + 1, 0:m.h1]          # (1, h1)
    w2 = p_ref[m.r_w2:m.r_w2 + m.h1, 0:m.h2]       # (h1, h2)
    b2 = p_ref[m.r_b2:m.r_b2 + 1, 0:m.h2]          # (1, h2)
    w3 = p_ref[m.r_w3:m.r_w3 + m.h2, 0:m.d_out]    # (h2, d_out)
    b3 = p_ref[m.r_b3:m.r_b3 + 1, 0:m.d_out]       # (1, d_out)

    # Layer 1: Linear + ReLU (Dropout is identity in eval mode).
    a1 = jnp.dot(x_ref[...], w1_ref[...], preferred_element_type=jnp.float32)
    a1 = jnp.maximum(a1 + b1, 0.0)
    # Layer 2: Linear + ReLU.
    a2 = jnp.dot(a1, w2, preferred_element_type=jnp.float32)
    a2 = jnp.maximum(a2 + b2, 0.0)
    # Layer 3: Linear (output head).
    out = jnp.dot(a2, w3, preferred_element_type=jnp.float32) + b3
    o_ref[...] = out.astype(o_ref.dtype)


def _choose_tiling(n, d_in, itemsize, block_m):
    """Pick (tm, num_steps).  tm is a multiple of 8 (or == n for a single tile)."""
    # Cap tm so the double-buffered x tile stays within ~20 MiB of VMEM (leaves slack
    # for w1/out/packed buffers inside the 32 MiB scoped limit we request).
    x_budget = 20 << 20
    cap = max(8, (x_budget // (2 * d_in * itemsize)) // 8 * 8)
    tm_max = max(8, min(block_m, cap) // 8 * 8)

    if n <= tm_max:
        if n < 512:
            return n, 1                       # tiny batch: single tile
        steps = 2                              # split so v7x's two TCs both get work
    else:
        steps = pl.cdiv(n, tm_max)
        steps += steps % 2                     # even step count -> balanced dual-TC
    tm = min(tm_max, _round_up(pl.cdiv(n, steps), 8))
    return tm, pl.cdiv(n, tm)


def sehe4678_forward(x, w1, packed, meta, *, block_m=2048, vmem_limit_bytes=32 << 20):
    """x: (N, C, H, W) (or already (N, d_in)).  Returns (N, d_out) float32.

    x is consumed in whatever dtype the producer supplies (pass bf16 end-to-end to halve
    the dominant HBM traffic); accumulation is always f32 on the MXU.
    """
    n = x.shape[0]
    x_flat = x.reshape(n, -1)                  # nn.Flatten, row-major like PyTorch
    d_in = x_flat.shape[1]
    assert w1.shape[0] == d_in, "w1 fan-in must match flattened input size"

    # Match w1 to x's dtype (tiny, ~d_in*h1 elements); ideally the caller supplies it
    # pre-cast so this is a no-op.
    if w1.dtype != x_flat.dtype:
        w1 = w1.astype(x_flat.dtype)

    tm, steps = _choose_tiling(n, d_in, x_flat.dtype.itemsize, block_m)
    p_rows, cols = packed.shape

    kernel = functools.partial(_mlp_kernel, meta=meta)

    flops = 2 * n * (d_in * meta.h1 + meta.h1 * meta.h2 + meta.h2 * meta.d_out)
    bytes_accessed = (x_flat.size * x_flat.dtype.itemsize
                      + w1.size * w1.dtype.itemsize
                      + packed.size * packed.dtype.itemsize
                      + n * meta.d_out * 4)

    # TODO(synk): if d_in grows past a few K, add an "arbitrary" K grid axis over d_in with
    # a VMEM f32 accumulator (pl.when init/finalize) instead of keeping w1 and the
    # full-width x tile resident.
    return pl.pallas_call(
        kernel,
        out_shape=jax.ShapeDtypeStruct((n, meta.d_out), jnp.float32),
        grid=(steps,),
        in_specs=[
            pl.BlockSpec((tm, d_in), lambda i: (i, 0)),        # x: streamed over batch
            pl.BlockSpec((d_in, meta.h1), lambda i: (0, 0)),   # w1: VMEM-resident
            pl.BlockSpec((p_rows, cols), lambda i: (0, 0)),    # packed small params
        ],
        out_specs=pl.BlockSpec((tm, meta.d_out), lambda i: (i, 0)),
        compiler_params=pltpu.CompilerParams(
            dimension_semantics=("parallel",),
            vmem_limit_bytes=vmem_limit_bytes),
        cost_estimate=pl.CostEstimate(
            flops=flops, transcendentals=0, bytes_accessed=bytes_accessed),
    )(x_flat, w1, packed)


def sehe4678_forward_unpacked(x, w1, b1, w2, b2, w3, b3, **kw):
    """Convenience wrapper (packs the small params on every call; prefer the packed path)."""
    packed, meta = pack_small_params(b1, w2, b2, w3, b3)
    return sehe4678_forward(x, w1, packed, meta, **kw)


def init_params(key, input_layer, hidden1, hidden2, output_layer=1):
    """Deterministic init mimicking PyTorch's default Linear init (U[-1/sqrt(fan_in), +])."""
    ks = jax.random.split(key, 6)

    def lin(kw, kb, fan_in, fan_out):
        bound = 1.0 / jnp.sqrt(jnp.float32(fan_in))
        w = jax.random.uniform(kw, (fan_in, fan_out), jnp.float32, -bound, bound)
        b = jax.random.uniform(kb, (fan_out,), jnp.float32, -bound, bound)
        return w, b

    w1, b1 = lin(ks[0], ks[1], input_layer, hidden1)
    w2, b2 = lin(ks[2], ks[3], hidden1, hidden2)
    w3, b3 = lin(ks[4], ks[5], hidden2, output_layer)
    return w1, b1, w2, b2, w3, b3


def _ref_forward(x, w1, b1, w2, b2, w3, b3):
    xf = x.reshape(x.shape[0], -1).astype(jnp.float32)
    h = jnp.maximum(xf @ w1 + b1, 0.0)
    h = jnp.maximum(h @ w2 + b2, 0.0)
    return h @ w3 + b3


if __name__ == "__main__":
    key = jax.random.PRNGKey(0)
    k_x, k_p, k_big = jax.random.split(key, 3)

    # Shapes consistent with the module: x (2, 4, 16, 16) -> input_layer = 1024.
    N, C, H, W = 2, 4, 16, 16
    input_layer = C * H * W
    hidden1, hidden2, output_layer = 32, 16, 1

    x = jax.random.normal(k_x, (N, C, H, W), jnp.float32)
    w1, b1, w2, b2, w3, b3 = init_params(k_p, input_layer, hidden1, hidden2, output_layer)

    # Pack the small params ONCE per parameter set (hoisted out of the per-call path).
    packed, meta = pack_small_params(b1, w2, b2, w3, b3)

    # --- f32, tiny batch: single-tile grid (exact PyTorch eval semantics).
    y = jax.block_until_ready(sehe4678_forward(x, w1, packed, meta))
    ref = _ref_forward(x, w1, b1, w2, b2, w3, b3)
    assert y.shape == (N, output_layer)
    assert jnp.allclose(y, ref, atol=1e-4, rtol=1e-4)

    # --- f32, larger non-aligned batch: even 2-step grid (dual-TC friendly) with the
    #     ragged tail block handled by Pallas directly — no wrapper pad / slice.
    NB = 1037
    xb = jax.random.normal(k_big, (NB, C, H, W), jnp.float32)
    yb = jax.block_until_ready(sehe4678_forward(xb, w1, packed, meta))
    refb = _ref_forward(xb, w1, b1, w2, b2, w3, b3)
    assert yb.shape == (NB, output_layer)
    assert jnp.allclose(yb, refb, atol=1e-4, rtol=1e-4)

    # --- bf16 activations supplied by the producer (no recast inside the wrapper);
    #     f32 MXU accumulation, loose tolerance.
    xb_bf16 = xb.astype(jnp.bfloat16)
    yb_bf16 = jax.block_until_ready(sehe4678_forward(xb_bf16, w1, packed, meta))
    assert yb_bf16.shape == (NB, output_layer)
    assert jnp.allclose(yb_bf16, refb, atol=1e-1, rtol=1e-1)

    print("KERNEL_OK")
</pallas_src>

<mosaic_0001>
module attributes {stable_mosaic.version = 11 : i64} {
  func.func @_mlp_kernel(%arg0: i32, %arg1: memref<2x1024xf32, #tpu.memory_space<vmem>>, %arg2: memref<1024x32xf32, #tpu.memory_space<vmem>>, %arg3: memref<72x32xf32, #tpu.memory_space<vmem>>, %arg4: memref<2x1xf32, #tpu.memory_space<vmem>>) attributes {dimension_semantics = [#tpu.dimension_semantics<parallel>], iteration_bounds = array<i64: 1>, scalar_prefetch = 0 : i64, scratch_operands = 0 : i64, tpu.core_type = #tpu.core_type<tc>, window_params = [{transform_indices = @transform_0, window_bounds = array<i64: 2, 1024>}, {pipeline_mode = #tpu.pipeline_mode<synchronous>, transform_indices = @transform_1, window_bounds = array<i64: 1024, 32>}, {pipeline_mode = #tpu.pipeline_mode<synchronous>, transform_indices = @transform_2, window_bounds = array<i64: 72, 32>}, {transform_indices = @transform_3, window_bounds = array<i64: 2, 1>}]} {
    %c0 = arith.constant 0 : index
    %c0_0 = arith.constant 0 : index
    %0 = vector.load %arg3[%c0, %c0_0] : memref<72x32xf32, #tpu.memory_space<vmem>>, vector<1x32xf32>
    %c8 = arith.constant 8 : index
    %c0_1 = arith.constant 0 : index
    %1 = vector.load %arg3[%c8, %c0_1] : memref<72x32xf32, #tpu.memory_space<vmem>>, vector<32x16xf32>
    %c40 = arith.constant 40 : index
    %c0_2 = arith.constant 0 : index
    %2 = vector.load %arg3[%c40, %c0_2] : memref<72x32xf32, #tpu.memory_space<vmem>>, vector<1x16xf32>
    %c48 = arith.constant 48 : index
    %c0_3 = arith.constant 0 : index
    %3 = vector.load %arg3[%c48, %c0_3] : memref<72x32xf32, #tpu.memory_space<vmem>>, vector<16x1xf32>
    %c64 = arith.constant 64 : index
    %c0_4 = arith.constant 0 : index
    %4 = vector.load %arg3[%c64, %c0_4] : memref<72x32xf32, #tpu.memory_space<vmem>>, vector<1x1xf32>
    %c0_5 = arith.constant 0 : index
    %c0_6 = arith.constant 0 : index
    %5 = vector.load %arg1[%c0_5, %c0_6] : memref<2x1024xf32, #tpu.memory_space<vmem>>, vector<2x1024xf32>
    %c0_7 = arith.constant 0 : index
    %c0_8 = arith.constant 0 : index
    %6 = vector.load %arg2[%c0_7, %c0_8] : memref<1024x32xf32, #tpu.memory_space<vmem>>, vector<1024x32xf32>
    %cst = arith.constant dense<0.000000e+00> : vector<2x32xf32>
    %7 = tpu.matmul %5, %6, %cst {dimension_numbers = #tpu.dot_dimension_numbers<[1], [0], [0], [1], [0, 0, 1, 1], [], []>} : vector<2x1024xf32>, vector<1024x32xf32>, vector<2x32xf32> -> vector<2x32xf32>
    %8 = vector.broadcast %0 : vector<1x32xf32> to vector<2x32xf32>
    %9 = arith.addf %7, %8 : vector<2x32xf32>
    %cst_9 = arith.constant 0.000000e+00 : f32
    %10 = vector.broadcast %cst_9 : f32 to vector<2x32xf32>
    %11 = arith.maximumf %9, %10 : vector<2x32xf32>
    %cst_10 = arith.constant dense<0.000000e+00> : vector<2x16xf32>
    %12 = tpu.matmul %11, %1, %cst_10 {dimension_numbers = #tpu.dot_dimension_numbers<[1], [0], [0], [1], [0, 0, 1, 1], [], []>} : vector<2x32xf32>, vector<32x16xf32>, vector<2x16xf32> -> vector<2x16xf32>
    %13 = vector.broadcast %2 : vector<1x16xf32> to vector<2x16xf32>
    %14 = arith.addf %12, %13 : vector<2x16xf32>
    %cst_11 = arith.constant 0.000000e+00 : f32
    %15 = vector.broadcast %cst_11 : f32 to vector<2x16xf32>
    %16 = arith.maximumf %14, %15 : vector<2x16xf32>
    %cst_12 = arith.constant dense<0.000000e+00> : vector<2x1xf32>
    %17 = tpu.matmul %16, %3, %cst_12 {dimension_numbers = #tpu.dot_dimension_numbers<[1], [0], [0], [1], [0, 0, 1, 1], [], []>} : vector<2x16xf32>, vector<16x1xf32>, vector<2x1xf32> -> vector<2x1xf32>
    %18 = vector.broadcast %4 : vector<1x1xf32> to vector<2x1xf32>
    %19 = arith.addf %17, %18 : vector<2x1xf32>
    %c0_13 = arith.constant 0 : index
    %c0_14 = arith.constant 0 : index
    %20 = vector.load %arg4[%c0_13, %c0_14] : memref<2x1xf32, #tpu.memory_space<vmem>>, vector<2x1xf32>
    tpu.vector_store %arg4[%c0_13, %c0_14], %19 {strides = array<i32>} : memref<2x1xf32, #tpu.memory_space<vmem>>, vector<2x1xf32>,
    return
  }
  func.func @transform_0(%arg0: i32) -> (i32, i32) {
    %c0_i32 = arith.constant 0 : i32
    %c0_i32_0 = arith.constant 0 : i32
    return %arg0, %c0_i32 : i32, i32
  }
  func.func @transform_1(%arg0: i32) -> (i32, i32) {
    %c0_i32 = arith.constant 0 : i32
    %c0_i32_0 = arith.constant 0 : i32
    %c0_i32_1 = arith.constant 0 : i32
    return %c0_i32, %c0_i32_0 : i32, i32
  }
  func.func @transform_2(%arg0: i32) -> (i32, i32) {
    %c0_i32 = arith.constant 0 : i32
    %c0_i32_0 = arith.constant 0 : i32
    %c0_i32_1 = arith.constant 0 : i32
    return %c0_i32, %c0_i32_0 : i32, i32
  }
  func.func @transform_3(%arg0: i32) -> (i32, i32) {
    %c0_i32 = arith.constant 0 : i32
    %c0_i32_0 = arith.constant 0 : i32
    return %arg0, %c0_i32 : i32, i32
  }
}

</mosaic_0001>

<bundles_post_ra>
// kernel: tpu_custom_call.1
= control target key start
LH: loop header
LB: loop body
LE: loop exit
PB: predicated region body
PF: predicated region fallthrough
CT: control target
= control target key end

     0   :  { %v959_v47 = vmov 1983009808   ;;  %v163_v49 = vlaneseq  ;;  %vm961_vm0 = vmmov 0   ;;  %vm486_vm1 = vcmask 261120   ;;  %s1413_s1 = inlined_call_operand.vmem [shape: f32[1024,32], index: 1, kind: input, shape index: {}]   ;;  %s1414_s0 = inlined_call_operand.vmem [shape: f32[2,1024], index: 0, kind: input, shape index: {}]   ;;  %s1415_s2 = inlined_call_operand.vmem [shape: f32[72,32], index: 2, kind: input, shape index: {}]   ;;  %s1416_s3 = inlined_call_operand.vmem [shape: f32[2,1], index: 3, kind: output, shape index: {}]  }
   0x1   :  { %v41_v0 = vld [vmem:[%s1413_s1 + $0x80] sm:$0xff]  ;;  %v42_v1 = vld [vmem:[%s1413_s1 + $0x88] sm:$0xff]  ;;  %v43_v11 = vld [vmem:[%s1413_s1 + $0x90] sm:$0xff]  ;;  %v161_v48 = vunpack.c.l.s4 %v959_v47  ;;  %vm565_vm2 = vcmask 130048   ;;  %vm639_vm3 = vcmask 1024  }
   0x2   :  { %v25_v2 = vld [vmem:[%s1413_s1] sm:$0xff]  ;;  %v816_v3 = vpack.c.bf16 %v42_v1, %v41_v0  ;;  %v26_v4 = vld [vmem:[%s1413_s1 + $0x8] sm:$0xff]  ;;  %v44_v13 = vld [vmem:[%s1413_s1 + $0x98] sm:$0xff]  ;;  %v164_v0 = vshrl.u32 %v163_v49, 7 }
   0x3   :  { %v73_v5 = vld [vmem:[%s1413_s1 + $0x180] sm:$0xff]  ;;  %v74_v6 = vld [vmem:[%s1413_s1 + $0x188] sm:$0xff]  ;;  %v818_v7 = vpack.c.bf16 %v26_v4, %v25_v2  ;;  %v27_v14 = vld [vmem:[%s1413_s1 + $0x10] sm:$0xff]  ;;  %v820_v16 = vpack.c.bf16 %v44_v13, %v43_v11  ;;  %v162_v63 = vunpack.c.0.s8 %v161_v48 }
   0x4   :  { %v848_v8 = vpack.c.bf16 %v74_v6, %v73_v5  ;;  %v57_v9 = vld [vmem:[%s1413_s1 + $0x100] sm:$0xff]  ;;  %v58_v10 = vld [vmem:[%s1413_s1 + $0x108] sm:$0xff]  ;;  %817 = vmatprep.subr.bf16.mxu0 %v816_v3  ;;  %v28_v15 = vld [vmem:[%s1413_s1 + $0x18] sm:$0xff] }
   0x5   :  { %v850_v12 = vpack.c.bf16 %v58_v10, %v57_v9  ;;  %819 = vmatpush3.bf16.msra.mxu0 %v818_v7  ;;  %v822_v17 = vpack.c.bf16 %v28_v15, %v27_v14  ;;  %v75_v18 = vld [vmem:[%s1413_s1 + $0x190] sm:$0xff]  ;;  %v76_v19 = vld [vmem:[%s1413_s1 + $0x198] sm:$0xff]  ;;  %v45_v23 = vld [vmem:[%s1413_s1 + $0xa0] sm:$0xff]  ;;  %v165_v13 = vsub.s32 %v162_v63, %v164_v0 }
   0x6   :  { %849 = vmatprep.subr.bf16.mxu1 %v848_v8  ;;  %v59_v20 = vld [vmem:[%s1413_s1 + $0x110] sm:$0xff]  ;;  %v852_v21 = vpack.c.bf16 %v76_v19, %v75_v18  ;;  %v60_v22 = vld [vmem:[%s1413_s1 + $0x118] sm:$0xff]  ;;  %v46_v24 = vld [vmem:[%s1413_s1 + $0xa8] sm:$0xff]  ;;  %821 = vmatprep.subr.bf16.mxu0 %v820_v16 }
   0x7   :  { %851 = vmatpush3.bf16.msra.mxu1 %v850_v12  ;;  %v854_v25 = vpack.c.bf16 %v60_v22, %v59_v20  ;;  %v824_v26 = vpack.c.bf16 %v46_v24, %v45_v23  ;;  %v29_v27 = vld [vmem:[%s1413_s1 + $0x20] sm:$0xff]  ;;  %v30_v28 = vld [vmem:[%s1413_s1 + $0x28] sm:$0xff]  ;;  %v47_v35 = vld [vmem:[%s1413_s1 + $0xb0] sm:$0xff] }
   0x8   :  { %v77_v29 = vld [vmem:[%s1413_s1 + $0x1a0] sm:$0xff]  ;;  %853 = vmatprep.subr.bf16.mxu1 %v852_v21  ;;  %v78_v30 = vld [vmem:[%s1413_s1 + $0x1a8] sm:$0xff]  ;;  %v826_v33 = vpack.c.bf16 %v30_v28, %v29_v27  ;;  %v48_v36 = vld [vmem:[%s1413_s1 + $0xb8] sm:$0xff] }
   0x9   :  { %v61_v31 = vld [vmem:[%s1413_s1 + $0x120] sm:$0xff]  ;;  %v62_v32 = vld [vmem:[%s1413_s1 + $0x128] sm:$0xff]  ;;  %823 = vmatpush3.bf16.msra.mxu0 %v822_v17  ;;  %v856_v34 = vpack.c.bf16 %v78_v30, %v77_v29  ;;  %v31_v37 = vld [vmem:[%s1413_s1 + $0x30] sm:$0xff]  ;;  %v828_v39 = vpack.c.bf16 %v48_v36, %v47_v35 }
   0xa   :  { %825 = vmatprep.subr.bf16.mxu0 %v824_v26  ;;  %v858_v38 = vpack.c.bf16 %v62_v32, %v61_v31  ;;  %v32_v40 = vld [vmem:[%s1413_s1 + $0x38] sm:$0xff]  ;;  %v79_v41 = vld [vmem:[%s1413_s1 + $0x1b0] sm:$0xff]  ;;  %v49_v46 = vld [vmem:[%s1413_s1 + $0xc0] sm:$0xff] }
   0xb   :  { %855 = vmatpush3.bf16.msra.mxu1 %v854_v25  ;;  %v80_v42 = vld [vmem:[%s1413_s1 + $0x1b8] sm:$0xff]  ;;  %v63_v44 = vld [vmem:[%s1413_s1 + $0x130] sm:$0xff]  ;;  %v50_v50 = vld [vmem:[%s1413_s1 + $0xc8] sm:$0xff]  ;;  %v830_v51 = vpack.c.bf16 %v32_v40, %v31_v37 }
   0xc   :  { %857 = vmatprep.subr.bf16.mxu1 %v856_v34  ;;  %v860_v43 = vpack.c.bf16 %v80_v42, %v79_v41  ;;  %v64_v45 = vld [vmem:[%s1413_s1 + $0x138] sm:$0xff]  ;;  %v81_v52 = vld [vmem:[%s1413_s1 + $0x1c0] sm:$0xff]  ;;  %v82_v53 = vld [vmem:[%s1413_s1 + $0x1c8] sm:$0xff]  ;;  %v832_v55 = vpack.c.bf16 %v50_v50, %v49_v46 }
   0xd   :  { %827 = vmatpush3.bf16.msra.mxu0 %v826_v33  ;;  %v862_v54 = vpack.c.bf16 %v64_v45, %v63_v44  ;;  %v33_v56 = vld [vmem:[%s1413_s1 + $0x40] sm:$0xff]  ;;  %v34_v57 = vld [vmem:[%s1413_s1 + $0x48] sm:$0xff]  ;;  %v864_v59 = vpack.c.bf16 %v82_v53, %v81_v52  ;;  %v51_v61 = vld [vmem:[%s1413_s1 + $0xd0] sm:$0xff] }
   0xe   :  { %829 = vmatprep.subr.bf16.mxu0 %v828_v39  ;;  %v65_v58 = vld [vmem:[%s1413_s1 + $0x140] sm:$0xff]  ;;  %v66_v60 = vld [vmem:[%s1413_s1 + $0x148] sm:$0xff]  ;;  %v52_v62 = vld [vmem:[%s1413_s1 + $0xd8] sm:$0xff]  ;;  %v834_v3 = vpack.c.bf16 %v34_v57, %v33_v56 }
   0xf   :  { %859 = vmatpush3.bf16.msra.mxu1 %v858_v38  ;;  %v83_v1 = vld [vmem:[%s1413_s1 + $0x1d0] sm:$0xff]  ;;  %v84_v2 = vld [vmem:[%s1413_s1 + $0x1d8] sm:$0xff]  ;;  %v866_v4 = vpack.c.bf16 %v66_v60, %v65_v58  ;;  %v836_v5 = vpack.c.bf16 %v52_v62, %v51_v61  ;;  %v53_v11 = vld [vmem:[%s1413_s1 + $0xe0] sm:$0xff] }
  0x10   :  { %861 = vmatprep.subr.bf16.mxu1 %v860_v43  ;;  %v35_v6 = vld [vmem:[%s1413_s1 + $0x50] sm:$0xff]  ;;  %v36_v7 = vld [vmem:[%s1413_s1 + $0x58] sm:$0xff]  ;;  %v868_v9 = vpack.c.bf16 %v84_v2, %v83_v1  ;;  %v54_v12 = vld [vmem:[%s1413_s1 + $0xe8] sm:$0xff] }
  0x11   :  { %831 = vmatpush3.bf16.msra.mxu0 %v830_v51  ;;  %v67_v8 = vld [vmem:[%s1413_s1 + $0x150] sm:$0xff]  ;;  %v68_v10 = vld [vmem:[%s1413_s1 + $0x158] sm:$0xff]  ;;  %v85_v14 = vld [vmem:[%s1413_s1 + $0x1e0] sm:$0xff]  ;;  %v838_v16 = vpack.c.bf16 %v36_v7, %v35_v6  ;;  %v840_v19 = vpack.c.bf16 %v54_v12, %v53_v11 }
  0x12   :  { %833 = vmatprep.subr.bf16.mxu0 %v832_v55  ;;  %v86_v15 = vld [vmem:[%s1413_s1 + $0x1e8] sm:$0xff]  ;;  %v37_v17 = vld [vmem:[%s1413_s1 + $0x60] sm:$0xff]  ;;  %v870_v18 = vpack.c.bf16 %v68_v10, %v67_v8  ;;  %v55_v25 = vld [vmem:[%s1413_s1 + $0xf0] sm:$0xff] }
  0x13   :  { %863 = vmatpush3.bf16.msra.mxu1 %v862_v54  ;;  %v38_v20 = vld [vmem:[%s1413_s1 + $0x68] sm:$0xff]  ;;  %v69_v21 = vld [vmem:[%s1413_s1 + $0x160] sm:$0xff]  ;;  %v872_v23 = vpack.c.bf16 %v86_v15, %v85_v14  ;;  %v56_v26 = vld [vmem:[%s1413_s1 + $0xf8] sm:$0xff] }
  0x14   :  { %865 = vmatprep.subr.bf16.mxu1 %v864_v59  ;;  %v23_v22 = vld [vmem:[%s1414_s0] sm:$0xff]  ;;  %v70_v24 = vld [vmem:[%s1413_s1 + $0x168] sm:$0xff]  ;;  %v87_v29 = vld [vmem:[%s1413_s1 + $0x1f0] sm:$0xff]  ;;  %v842_v31 = vpack.c.bf16 %v38_v20, %v37_v17  ;;  %v844_v36 = vpack.c.bf16 %v56_v26, %v55_v25 }
  0x15   :  { %835 = vmatpush3.bf16.msra.mxu0 %v834_v3  ;;  %v166_v27 = vrot.slane %v23_v22, %v165_v13  ;;  %v159_v28 = vcombine.high %v23_v22, %v23_v22  ;;  %v88_v30 = vld [vmem:[%s1413_s1 + $0x1f8] sm:$0xff]  ;;  %v24_v32 = vld [vmem:[%s1414_s0 + $0x8] sm:$0xff]  ;;  %v874_v35 = vpack.c.bf16 %v70_v24, %v69_v21  ;;  %v39_v37 = vld [vmem:[%s1413_s1 + $0x70] sm:$0xff] }
  0x16   :  { %837 = vmatprep.subr.bf16.mxu0 %v836_v5  ;;  %v40_v38 = vld [vmem:[%s1413_s1 + $0x78] sm:$0xff]  ;;  %v71_v39 = vld [vmem:[%s1413_s1 + $0x170] sm:$0xff]  ;;  %v876_v40 = vpack.c.bf16 %v88_v30, %v87_v29  ;;  %v105_v42 = vld [vmem:[%s1413_s1 + $0x280] sm:$0xff]  ;;  %v176_v45 = vcombine.high %v24_v32, %v24_v32  ;;  %v1211_v58 = vrot.slane %v24_v32, %v165_v13 }
  0x17   :  { %867 = vmatpush3.bf16.msra.mxu1 %v866_v4  ;;  %v174_v33 = vcombine.high %v166_v27, %v166_v27  ;;  %v173_v34 = vrot.slane %v159_v28, %v165_v13  ;;  %v72_v41 = vld [vmem:[%s1413_s1 + $0x178] sm:$0xff]  ;;  %v106_v43 = vld [vmem:[%s1413_s1 + $0x288] sm:$0xff]  ;;  %v137_v46 = vld [vmem:[%s1413_s1 + $0x380] sm:$0xff]  ;;  %v846_v48 = vpack.c.bf16 %v40_v38, %v39_v37 }
  0x18   :  { %869 = vmatprep.subr.bf16.mxu1 %v868_v9  ;;  %v138_v47 = vld [vmem:[%s1413_s1 + $0x388] sm:$0xff]  ;;  %v878_v49 = vpack.c.bf16 %v72_v41, %v71_v39  ;;  %v880_v50 = vpack.c.bf16 %v106_v43, %v105_v42  ;;  %v89_v51 = vld [vmem:[%s1413_s1 + $0x200] sm:$0xff]  ;;  %v107_v56 = vld [vmem:[%s1413_s1 + $0x290] sm:$0xff]  ;;  %v1219_v61 = vrot.slane %v176_v45, %v165_v13  ;;  %v191_v8 = vcombine.high %v1211_v58, %v1211_v58 }
  0x19   :  { %839 = vmatpush3.bf16.msra.mxu0 %v838_v16  ;;  %265 = vmatprep.mubr.f32.mxu0 %v174_v33  ;;  %v175_v44 = vcombine.high %v173_v34, %v173_v34  ;;  %v90_v52 = vld [vmem:[%s1413_s1 + $0x208] sm:$0xff]  ;;  %v121_v53 = vld [vmem:[%s1413_s1 + $0x300] sm:$0xff]  ;;  %v912_v54 = vpack.c.bf16 %v138_v47, %v137_v46  ;;  %v108_v57 = vld [vmem:[%s1413_s1 + $0x298] sm:$0xff] }
  0x1a   :  { %841 = vmatprep.subr.bf16.mxu0 %v840_v19  ;;  %v122_v55 = vld [vmem:[%s1413_s1 + $0x308] sm:$0xff]  ;;  %v139_v59 = vld [vmem:[%s1413_s1 + $0x390] sm:$0xff]  ;;  %v140_v60 = vld [vmem:[%s1413_s1 + $0x398] sm:$0xff]  ;;  %v882_v62 = vpack.c.bf16 %v90_v52, %v89_v51  ;;  %v884_v0 = vpack.c.bf16 %v108_v57, %v107_v56  ;;  %v192_v11 = vcombine.high %v1219_v61, %v1219_v61 }
  0x1b   :  { %871 = vmatpush3.bf16.msra.mxu1 %v870_v18  ;;  %335 = vmatprep.mubr.f32.mxu1 %v175_v44  ;;  %v914_v63 = vpack.c.bf16 %v122_v55, %v121_v53  ;;  %v91_v1 = vld [vmem:[%s1413_s1 + $0x210] sm:$0xff]  ;;  %v92_v2 = vld [vmem:[%s1413_s1 + $0x218] sm:$0xff]  ;;  %v916_v4 = vpack.c.bf16 %v140_v60, %v139_v59  ;;  %v109_v6 = vld [vmem:[%s1413_s1 + $0x2a0] sm:$0xff] }
  0x1c   :  { %873 = vmatprep.subr.bf16.mxu1 %v872_v23  ;;  %v123_v3 = vld [vmem:[%s1413_s1 + $0x310] sm:$0xff]  ;;  %v124_v5 = vld [vmem:[%s1413_s1 + $0x318] sm:$0xff]  ;;  %v110_v7 = vld [vmem:[%s1413_s1 + $0x2a8] sm:$0xff]  ;;  %v886_v12 = vpack.c.bf16 %v92_v2, %v91_v1 }
  0x1d   :  { %843 = vmatpush3.bf16.msra.mxu0 %v842_v31  ;;  %v141_v9 = vld [vmem:[%s1413_s1 + $0x3a0] sm:$0xff]  ;;  %v142_v10 = vld [vmem:[%s1413_s1 + $0x3a8] sm:$0xff]  ;;  %v918_v13 = vpack.c.bf16 %v124_v5, %v123_v3  ;;  %v888_v14 = vpack.c.bf16 %v110_v7, %v109_v6  ;;  %v111_v20 = vld [vmem:[%s1413_s1 + $0x2b0] sm:$0xff] }
  0x1e   :  { %845 = vmatprep.subr.bf16.mxu0 %v844_v36  ;;  %v93_v15 = vld [vmem:[%s1413_s1 + $0x220] sm:$0xff]  ;;  %v94_v16 = vld [vmem:[%s1413_s1 + $0x228] sm:$0xff]  ;;  %v920_v18 = vpack.c.bf16 %v142_v10, %v141_v9  ;;  %v112_v21 = vld [vmem:[%s1413_s1 + $0x2b8] sm:$0xff] }
  0x1f   :  { %875 = vmatpush3.bf16.msra.mxu1 %v874_v35  ;;  %v125_v17 = vld [vmem:[%s1413_s1 + $0x320] sm:$0xff]  ;;  %v126_v19 = vld [vmem:[%s1413_s1 + $0x328] sm:$0xff]  ;;  %v143_v22 = vld [vmem:[%s1413_s1 + $0x3b0] sm:$0xff]  ;;  %v890_v24 = vpack.c.bf16 %v94_v16, %v93_v15  ;;  %v892_v26 = vpack.c.bf16 %v112_v21, %v111_v20 }
  0x20   :  { %877 = vmatprep.subr.bf16.mxu1 %v876_v40  ;;  %v144_v23 = vld [vmem:[%s1413_s1 + $0x3b8] sm:$0xff]  ;;  %v922_v25 = vpack.c.bf16 %v126_v19, %v125_v17  ;;  %v127_v29 = vld [vmem:[%s1413_s1 + $0x330] sm:$0xff]  ;;  %v113_v32 = vld [vmem:[%s1413_s1 + $0x2c0] sm:$0xff] }
  0x21   :  { %847 = vmatpush3.bf16.msra.mxu0 %v846_v48  ;;  %v96_v28 = vld [vmem:[%s1413_s1 + $0x238] sm:$0xff]  ;;  %v924_v30 = vpack.c.bf16 %v144_v23, %v143_v22  ;;  %v114_v33 = vld [vmem:[%s1413_s1 + $0x2c8] sm:$0xff]  ;;  %v97_v39 = vld [vmem:[%s1413_s1 + $0x240] sm:$0xff]  ;;  %v960_v23 = vmov 0.0|0.0  }
  0x22   :  { %881 = vmatprep.subr.bf16.mxu0 %v880_v50  ;;  %v128_v31 = vld [vmem:[%s1413_s1 + $0x338] sm:$0xff]  ;;  %v146_v35 = vld [vmem:[%s1413_s1 + $0x3c8] sm:$0xff]  ;;  %v896_v38 = vpack.c.bf16 %v114_v33, %v113_v32  ;;  %v129_v41 = vld [vmem:[%s1413_s1 + $0x340] sm:$0xff] }
  0x23   :  { %879 = vmatpush3.bf16.msra.mxu1 %v878_v49  ;;  %v926_v37 = vpack.c.bf16 %v128_v31, %v127_v29  ;;  %v98_v40 = vld [vmem:[%s1413_s1 + $0x248] sm:$0xff]  ;;  %v115_v44 = vld [vmem:[%s1413_s1 + $0x2d0] sm:$0xff]  ;;  %v116_v45 = vld [vmem:[%s1413_s1 + $0x2d8] sm:$0xff] }
  0x24   :  { %913 = vmatprep.subr.bf16.mxu1 %v912_v54  ;;  %266 = vmatmul.mubr.f32.vlgmr.msra.gmra.mrb[0].mxu0 %v166_v27  ;;  %v95_v27 = vld [vmem:[%s1413_s1 + $0x230] sm:$0xff]  ;;  %v130_v43 = vld [vmem:[%s1413_s1 + $0x348] sm:$0xff]  ;;  %v148_v47 = vld [vmem:[%s1413_s1 + $0x3d8] sm:$0xff]  ;;  %v898_v48 = vpack.c.bf16 %v98_v40, %v97_v39  ;;  %v900_v50 = vpack.c.bf16 %v116_v45, %v115_v44 }
  0x25   :  { %883 = vmatpush3.bf16.msra.mxu0 %v882_v62  ;;  %405 = vmatprep.mubr.f32.mxu0 %v191_v8  ;;  %v894_v36 = vpack.c.bf16 %v96_v28, %v95_v27  ;;  %v147_v46 = vld [vmem:[%s1413_s1 + $0x3d0] sm:$0xff]  ;;  %v930_v49 = vpack.c.bf16 %v130_v43, %v129_v41  ;;  %v100_v52 = vld [vmem:[%s1413_s1 + $0x258] sm:$0xff]  ;;  %v117_v56 = vld [vmem:[%s1413_s1 + $0x2e0] sm:$0xff] }
  0x26   :  { %336 = vmatmul.mubr.f32.vlgmr.msra.gmra.mrb[0].mxu1 %v173_v34  ;;  %885 = vmatprep.subr.bf16.mxu0 %v884_v0  ;;  %v145_v34 = vld [vmem:[%s1413_s1 + $0x3c0] sm:$0xff]  ;;  %v99_v51 = vld [vmem:[%s1413_s1 + $0x250] sm:$0xff]  ;;  %v932_v54 = vpack.c.bf16 %v148_v47, %v147_v46  ;;  %v132_v55 = vld [vmem:[%s1413_s1 + $0x358] sm:$0xff] }
  0x27   :  { %915 = vmatpush3.bf16.msra.mxu1 %v914_v63  ;;  %475 = vmatprep.mubr.f32.mxu1 %v192_v11  ;;  %v928_v42 = vpack.c.bf16 %v146_v35, %v145_v34  ;;  %v131_v53 = vld [vmem:[%s1413_s1 + $0x350] sm:$0xff]  ;;  %v118_v57 = vld [vmem:[%s1413_s1 + $0x2e8] sm:$0xff]  ;;  %v149_v59 = vld [vmem:[%s1413_s1 + $0x3e0] sm:$0xff]  ;;  %v902_v62 = vpack.c.bf16 %v100_v52, %v99_v51 }
  0x28   :  { %917 = vmatprep.subr.bf16.mxu1 %v916_v4  ;;  %v150_v60 = vld [vmem:[%s1413_s1 + $0x3e8] sm:$0xff]  ;;  %v934_v63 = vpack.c.bf16 %v132_v55, %v131_v53  ;;  %v904_v0 = vpack.c.bf16 %v118_v57, %v117_v56  ;;  %v101_v1 = vld [vmem:[%s1413_s1 + $0x260] sm:$0xff]  ;;  %v119_v6 = vld [vmem:[%s1413_s1 + $0x2f0] sm:$0xff] }
  0x29   :  { %887 = vmatpush3.bf16.msra.mxu0 %v886_v12  ;;  %v102_v2 = vld [vmem:[%s1413_s1 + $0x268] sm:$0xff]  ;;  %v133_v3 = vld [vmem:[%s1413_s1 + $0x360] sm:$0xff]  ;;  %v936_v4 = vpack.c.bf16 %v150_v60, %v149_v59  ;;  %v120_v7 = vld [vmem:[%s1413_s1 + $0x2f8] sm:$0xff] }
  0x2a   :  { %889 = vmatprep.subr.bf16.mxu0 %v888_v14  ;;  %v134_v5 = vld [vmem:[%s1413_s1 + $0x368] sm:$0xff]  ;;  %v151_v8 = vld [vmem:[%s1413_s1 + $0x3f0] sm:$0xff]  ;;  %v152_v9 = vld [vmem:[%s1413_s1 + $0x3f8] sm:$0xff]  ;;  %v906_v10 = vpack.c.bf16 %v102_v2, %v101_v1  ;;  %v908_v12 = vpack.c.bf16 %v120_v7, %v119_v6 }
  0x2b   :  { %919 = vmatpush3.bf16.msra.mxu1 %v918_v13  ;;  %v938_v11 = vpack.c.bf16 %v134_v5, %v133_v3  ;;  %v103_v13 = vld [vmem:[%s1413_s1 + $0x270] sm:$0xff]  ;;  %v104_v14 = vld [vmem:[%s1413_s1 + $0x278] sm:$0xff]  ;;  %v940_v15 = vpack.c.bf16 %v152_v9, %v151_v8  ;;  %v15_v20 = vld [vmem:[%s1415_s2 + $0x8] sm:$0xff] }
  0x2c   :  { %921 = vmatprep.subr.bf16.mxu1 %v920_v18  ;;  %v135_v16 = vld [vmem:[%s1413_s1 + $0x370] sm:$0xff]  ;;  %v136_v17 = vld [vmem:[%s1413_s1 + $0x378] sm:$0xff]  ;;  %v910_v18 = vpack.c.bf16 %v104_v14, %v103_v13  ;;  %v645_v27 = vld [vmem:[%s1415_s2] ss:$0 sm:$0xff] }
  0x2d   :  { %891 = vmatpush3.bf16.msra.mxu0 %v890_v24  ;;  %v942_v19 = vpack.c.bf16 %v136_v17, %v135_v16  ;;  %v16_v21 = vld [vmem:[%s1415_s2 + $0x10] sm:$0xff]  ;;  %v21_v45 = vld [vmem:[%s1415_s2 + $0x38] sm:$0xff]  ;;  %v646_v47 = vld [vmem:[%s1415_s2 + $0x28] ss:$0 sm:$0xff] }
  0x2e   :  { %893 = vmatprep.subr.bf16.mxu0 %v892_v26  ;;  %v945_v22 = vpack.c.bf16 %v16_v21, %v15_v20  ;;  %v20_v44 = vld [vmem:[%s1415_s2 + $0x30] sm:$0xff]  ;;  %v648_v52 = vld [vmem:[%s1415_s2 + $0x40] ss:$0 sm:$0xff] }
  0x2f   :  { %923 = vmatpush3.bf16.msra.mxu1 %v922_v25  ;;  %v962_v25 = vmov 0.0   ;;  %v951_v46 = vpack.c.bf16 %v21_v45, %v20_v44 }
  0x30   :  { %925 = vmatprep.subr.bf16.mxu1 %v924_v30 }
  0x31   :  { %895 = vmatpush3.bf16.msra.mxu0 %v894_v36 }
  0x32   :  { %897 = vmatprep.subr.bf16.mxu0 %v896_v38 }
  0x33   :  { %927 = vmatpush3.bf16.msra.mxu1 %v926_v37 }
  0x34   :  { %929 = vmatprep.subr.bf16.mxu1 %v928_v42 }
  0x35   :  { %899 = vmatpush3.bf16.msra.mxu0 %v898_v48 }
  0x36   :  { %901 = vmatprep.subr.bf16.mxu0 %v900_v50 }
  0x37   :  { %931 = vmatpush3.bf16.msra.mxu1 %v930_v49 }
  0x38   :  { %933 = vmatprep.subr.bf16.mxu1 %v932_v54 }
  0x39   :  { %903 = vmatpush3.bf16.msra.mxu0 %v902_v62 }
  0x3a   :  { %905 = vmatprep.subr.bf16.mxu0 %v904_v0 }
  0x3b   :  { %935 = vmatpush3.bf16.msra.mxu1 %v934_v63 }
  0x3c   :  { %937 = vmatprep.subr.bf16.mxu1 %v936_v4 }
  0x3d   :  { %907 = vmatpush3.bf16.msra.mxu0 %v906_v10 }
  0x3e   :  { %909 = vmatprep.subr.bf16.mxu0 %v908_v12 }
  0x3f   :  { %939 = vmatpush3.bf16.msra.mxu1 %v938_v11 }
  0x40   :  { %941 = vmatprep.subr.bf16.mxu1 %v940_v15 }
  0x41   :  { %911 = vmatpush3.bf16.msra.mxu0 %v910_v18 }
  0x42   :  { %944 = vmatprep.subr.bf16.mxu0 %v960_v23 }
  0x43   :  { %943 = vmatpush3.bf16.msra.mxu1 %v942_v19 }
  0x44   :  { %406 = vmatmul.mubr.f32.vlgmr.msra.gmra.mrb[2].mxu0 %v1211_v58  ;;  %950 = vmatprep.subr.bf16.mxu1 %v960_v23  ;;  %v17_v58 = vld [vmem:[%s1415_s2 + $0x18] sm:$0xff] }
  0x45   :  { %946 = vmatpush3.bf16.msra.mxu0 %v945_v22  ;;  %806 = vmatprep.mubr.msk.f32.mxu0 %vm961_vm0, %v962_v25 }
  0x46   :  { %476 = vmatmul.mubr.f32.vlgmr.msra.gmra.mrb[2].mxu1 %v1219_v61  ;;  %947 = vmatprep.subr.bf16.mxu0 %v960_v23  ;;  %v18_v61 = vld [vmem:[%s1415_s2 + $0x20] sm:$0xff] }
  0x47   :  { %v948_v24 = vpack.c.bf16 %v18_v61, %v17_v58  ;;  %813 = vmatprep.mubr.msk.f32.mxu1 %vm961_vm0, %v962_v25  ;;  %952 = vmatpush3.bf16.msra.mxu1 %v951_v46 }
  0x49   :  { %949 = vmatpush3.bf16.msra.mxu0 %v948_v24 }
  0xf7   :  { %v682_v26 = vpop.f32.mrb[0].mxu0 }
  0xf8   :  { %v683_v28 = vpop.f32.mrb[1].mxu0 }
  0xf9   :  { %v717_v29 = vpop.f32.mrb[0].mxu1  ;;  %v684_v30 = vadd.f32 %v683_v28, %v682_v26 }
  0xfa   :  { %v718_v31 = vpop.f32.mrb[1].mxu1 }
  0xfb   :  { %v719_v32 = vadd.f32 %v718_v31, %v717_v29  ;;  %v268_v33 = vadd.f32 %v684_v30, %v645_v27 }
  0xfd   :  { %v338_v34 = vadd.f32 %v719_v32, %v268_v33 }
 0x117   :  { %v752_v35 = vpop.f32.mrb[2].mxu0 }
 0x118   :  { %v753_v36 = vpop.f32.mrb[3].mxu0 }
 0x119   :  { %v787_v37 = vpop.f32.mrb[2].mxu1  ;;  %v754_v38 = vadd.f32 %v753_v36, %v752_v35 }
 0x11a   :  { %v788_v39 = vpop.f32.mrb[3].mxu1 }
 0x11b   :  { %v789_v40 = vadd.f32 %v788_v39, %v787_v37  ;;  %v408_v41 = vadd.f32 %v754_v38, %v338_v34 }
 0x11d   :  { %v478_v42 = vadd.f32 %v789_v40, %v408_v41 }
 0x11f   :  { %v481_v43 = vmax.f32 %v478_v42, 0.0 }
 0x121   :  { %807 = vmatmul.mubr.msk.f32.vlgmr.msra.gmra.mrb[4].mxu0 %vm486_vm1, %v481_v43 }
 0x1f4   :  { %v556_v48 = vpop.f32.mrb[4].mxu0 }
 0x1f5   :  { %v557_v49 = vadd.f32 %v646_v47, %v556_v48  ;;  %v808_v50 = vpop.f32.mrb[5].mxu0 }
 0x1f7   :  { %v560_v51 = vmax.f32 %v557_v49, 0.0 }
 0x1f9   :  { %814 = vmatmul.mubr.msk.f32.vlgmr.msra.gmra.mrb[4].mxu1 %vm565_vm2, %v560_v51 }
 0x2cc   :  { %v635_v53 = vpop.f32.mrb[4].mxu1 }
 0x2cd   :  { %v636_v54 = vadd.f32 %v648_v52, %v635_v53  ;;  %v815_v55 = vpop.f32.mrb[5].mxu1 }
 0x2cf   :  { %640 = vst.msk [vmem:[%s1416_s3] sm:$0x3] %vm639_vm3, %v636_v54 }

</bundles_post_ra>
